<compile_context>
chip_gen: v5e
topology: v5e:2x2
jax: 0.10.0
libtpu: 0.0.40
codegen_flags: <defaults>
</compile_context>

<pallas_src>
import functools

import jax
import jax.numpy as jnp
from jax.experimental import pallas as pl
from jax.experimental.pallas import tpu as pltpu


_VMEM_SPEC = pl.BlockSpec(memory_space=pltpu.MemorySpace.VMEM)


def _round_up(x, m):
    return (x + m - 1) // m * m


# ---------------------------------------------------------------------------
# Pallas kernels
# ---------------------------------------------------------------------------

def l1_kernel(noise_ref, emb_ref, w_ref, scale_ref, shift_ref, o_ref):
    # gen_input = emb * noise; out = gen_input @ W^T, then per-feature
    # scale/shift (Linear bias + eval BatchNorm2d(128) folded together).
    g = (noise_ref[...] * emb_ref[...]).astype(w_ref.dtype)
    acc = jnp.dot(g, w_ref[...], preferred_element_type=jnp.float32)
    o_ref[...] = acc * scale_ref[...] + shift_ref[...]


def conv_kernel(p_ref, w_ref, scale_ref, shift_ref, o_ref, *, act):
    # p: (TM, K) bf16 im2col patches; w: (K, O_pad) bf16;
    # scale/shift: (1, O_pad) f32 = folded conv-bias + eval BatchNorm.
    acc = jnp.dot(p_ref[...], w_ref[...], preferred_element_type=jnp.float32)
    acc = acc * scale_ref[...] + shift_ref[...]
    if act == "leaky":
        acc = jnp.where(acc > 0, acc, 0.2 * acc)      # LeakyReLU(0.2)
    elif act == "tanh":
        acc = jnp.tanh(acc)                           # final Tanh
    o_ref[...] = acc.astype(o_ref.dtype)


# ---------------------------------------------------------------------------
# Glue: NHWC im2col (stride 1, pad 1, k=3) and nearest upsample
# ---------------------------------------------------------------------------

def im2col_nhwc(x, k=3, p=1):
    """x: (N, H, W, C) -> (N*H*W, k*k*C) patches, flatten order (kh, kw, C)."""
    N, H, W, C = x.shape
    xp = jnp.pad(x, ((0, 0), (p, p), (p, p), (0, 0)))
    cols = []
    for ki in range(k):
        for kj in range(k):
            cols.append(xp[:, ki:ki + H, kj:kj + W, :])       # (N, H, W, C)
    patches = jnp.stack(cols, axis=3)                          # (N, H, W, k*k, C)
    return patches.reshape(N * H * W, k * k * C)


def upsample2x(x):
    # nn.Upsample(scale_factor=2), nearest, NHWC.
    return jnp.repeat(jnp.repeat(x, 2, axis=1), 2, axis=2)


# ---------------------------------------------------------------------------
# Conv block wrapper: im2col + gridded Pallas matmul with fused epilogue
# ---------------------------------------------------------------------------

def conv_bn_act(x_nhwc, w, b, bn=None, act="leaky", out_dtype=jnp.bfloat16):
    """Conv2d(3, stride=1, pad=1) + optional eval-BN + activation, NHWC in/out."""
    N, H, W, _ = x_nhwc.shape
    O = w.shape[0]

    patches = im2col_nhwc(x_nhwc).astype(jnp.bfloat16)         # (M, K)
    M, K = patches.shape
    # PyTorch weight (O, C, kh, kw) -> (kh, kw, C, O) flatten to (K, O),
    # matching the (kh, kw, C) patch flatten order.
    w_flat = w.transpose(2, 3, 1, 0).reshape(K, O).astype(jnp.bfloat16)

    if bn is None:
        scale = jnp.ones((O,), jnp.float32)
        shift = b.astype(jnp.float32)
    else:
        gamma, beta, mean, var, eps = bn
        s = gamma / jnp.sqrt(var + eps)
        scale = s
        shift = beta + s * (b - mean)                          # bias folded into BN

    # Lane-dense output: pad O up to a multiple of 128.
    O_pad = _round_up(O, 128)
    if O_pad != O:
        w_flat = jnp.pad(w_flat, ((0, 0), (0, O_pad - O)))
        scale = jnp.pad(scale, (0, O_pad - O))
        shift = jnp.pad(shift, (0, O_pad - O))

    # Tile over M (large rows amortize per-step overhead; double-buffered).
    TM = 512 if M >= 512 else _round_up(M, 8)
    M_pad = _round_up(M, TM)
    if M_pad != M:
        patches = jnp.pad(patches, ((0, M_pad - M), (0, 0)))

    grid = (M_pad // TM,)
    out_bytes = M_pad * O_pad * jnp.dtype(out_dtype).itemsize
    out = pl.pallas_call(
        functools.partial(conv_kernel, act=act),
        out_shape=jax.ShapeDtypeStruct((M_pad, O_pad), out_dtype),
        grid=grid,
        in_specs=[
            pl.BlockSpec((TM, K), lambda i: (i, 0)),
            pl.BlockSpec((K, O_pad), lambda i: (0, 0)),
            pl.BlockSpec((1, O_pad), lambda i: (0, 0)),
            pl.BlockSpec((1, O_pad), lambda i: (0, 0)),
        ],
        out_specs=pl.BlockSpec((TM, O_pad), lambda i: (i, 0)),
        compiler_params=pltpu.CompilerParams(
            dimension_semantics=("parallel",),
            vmem_limit_bytes=64 * 1024 * 1024,
        ),
        cost_estimate=pl.CostEstimate(
            flops=2 * M_pad * K * O_pad,
            transcendentals=M_pad * O_pad if act == "tanh" else 0,
            bytes_accessed=int(patches.size * 2 + w_flat.size * 2 + out_bytes),
        ),
    )(patches, w_flat, scale.reshape(1, O_pad), shift.reshape(1, O_pad))

    return out[:M, :O].reshape(N, H, W, O)


# ---------------------------------------------------------------------------
# Parameters (deterministic synthetic init) and full forward
# ---------------------------------------------------------------------------

def init_params(key, channels, img_size, n_c, n_z):
    ks = jax.random.split(key, 5)
    init_size = img_size // 4
    feat = 128 * init_size ** 2

    def conv_w(k, o, i):
        return (0.02 * jax.random.normal(k, (o, i, 3, 3))).astype(jnp.float32)

    def bn(c, eps):
        # (gamma, beta, running_mean, running_var, eps) — eval mode.
        return (jnp.ones((c,), jnp.float32), jnp.zeros((c,), jnp.float32),
                jnp.zeros((c,), jnp.float32), jnp.ones((c,), jnp.float32), eps)

    return {
        "emb": (0.02 * jax.random.normal(ks[0], (n_c, n_z))).astype(jnp.float32),
        "l1_w": (0.02 * jax.random.normal(ks[1], (feat, n_z))).astype(jnp.float32),
        "l1_b": jnp.zeros((feat,), jnp.float32),
        "bn0": bn(128, 1e-5),                      # nn.BatchNorm2d(128)
        "w1": conv_w(ks[2], 128, 128), "b1": jnp.zeros((128,), jnp.float32),
        "bn1": bn(128, 0.8),                       # nn.BatchNorm2d(128, 0.8)
        "w2": conv_w(ks[3], 64, 128),  "b2": jnp.zeros((64,), jnp.float32),
        "bn2": bn(64, 0.8),                        # nn.BatchNorm2d(64, 0.8)
        "w3": conv_w(ks[4], channels, 64), "b3": jnp.zeros((channels,), jnp.float32),
    }


def generator_forward(noise, labels, params, img_size):
    N, _ = noise.shape
    init_size = img_size // 4
    feat = 128 * init_size ** 2

    # Embedding lookup (plain-JAX gather glue).
    emb = jnp.take(params["emb"], labels, axis=0)              # (N, n_z)

    # Fold the first eval-mode BatchNorm2d(128) (applied after .view to NCHW)
    # into per-output-feature scale/shift of the Linear: the flatten is
    # channel-major, so each channel owns a contiguous block of init_size^2
    # features.
    gamma, beta, mean, var, eps = params["bn0"]
    s = gamma / jnp.sqrt(var + eps)                            # (128,)
    rep = init_size * init_size
    scale_vec = jnp.repeat(s, rep)                             # (feat,)
    shift_vec = scale_vec * params["l1_b"] + jnp.repeat(beta - s * mean, rep)

    wl = params["l1_w"].T.astype(jnp.bfloat16)                 # (n_z, feat)
    out = pl.pallas_call(
        l1_kernel,
        out_shape=jax.ShapeDtypeStruct((N, feat), jnp.float32),
        in_specs=[_VMEM_SPEC] * 5,
        out_specs=_VMEM_SPEC,
    )(noise, emb, wl, scale_vec.reshape(1, feat), shift_vec.reshape(1, feat))

    # .view(N, 128, s, s) then go to NHWC once; stay NHWC/bf16 between layers.
    x = out.reshape(N, 128, init_size, init_size).transpose(0, 2, 3, 1)
    x = x.astype(jnp.bfloat16)

    x = upsample2x(x)                                          # (N, 2s, 2s, 128)
    x = conv_bn_act(x, params["w1"], params["b1"], bn=params["bn1"],
                    act="leaky", out_dtype=jnp.bfloat16)
    x = upsample2x(x)                                          # (N, 4s, 4s, 128)
    x = conv_bn_act(x, params["w2"], params["b2"], bn=params["bn2"],
                    act="leaky", out_dtype=jnp.bfloat16)
    x = conv_bn_act(x, params["w3"], params["b3"], bn=None,
                    act="tanh", out_dtype=jnp.float32)         # (N, H, W, C)

    return x.transpose(0, 3, 1, 2)                             # NCHW like PyTorch


if __name__ == "__main__":
    batch, channels, img_size, n_c, n_z = 2, 4, 16, 10, 32
    key = jax.random.PRNGKey(0)
    k_noise, k_lab, k_par = jax.random.split(key, 3)
    noise = jax.random.normal(k_noise, (batch, n_z), jnp.float32)
    labels = jax.random.randint(k_lab, (batch,), 0, n_c)
    params = init_params(k_par, channels, img_size, n_c, n_z)

    img = generator_forward(noise, labels, params, img_size)
    jax.block_until_ready(img)

    assert img.shape == (batch, channels, img_size, img_size)
    assert bool(jnp.all(jnp.isfinite(img)))
    assert bool(jnp.all(jnp.abs(img) <= 1.0 + 1e-6))   # Tanh range
    print("KERNEL_OK")
</pallas_src>

<mosaic_0001>
module attributes {stable_mosaic.version = 11 : i64} {
  func.func @l1_kernel(%arg0: memref<2x32xf32, #tpu.memory_space<vmem>>, %arg1: memref<2x32xf32, #tpu.memory_space<vmem>>, %arg2: memref<32x2048xbf16, #tpu.memory_space<vmem>>, %arg3: memref<1x2048xf32, #tpu.memory_space<vmem>>, %arg4: memref<1x2048xf32, #tpu.memory_space<vmem>>, %arg5: memref<2x2048xf32, #tpu.memory_space<vmem>>) attributes {dimension_semantics = [], scalar_prefetch = 0 : i64, scratch_operands = 0 : i64, tpu.core_type = #tpu.core_type<tc>} {
    %c0 = arith.constant 0 : index
    %c0_0 = arith.constant 0 : index
    %0 = vector.load %arg0[%c0, %c0_0] : memref<2x32xf32, #tpu.memory_space<vmem>>, vector<2x32xf32>
    %c0_1 = arith.constant 0 : index
    %c0_2 = arith.constant 0 : index
    %1 = vector.load %arg1[%c0_1, %c0_2] : memref<2x32xf32, #tpu.memory_space<vmem>>, vector<2x32xf32>
    %2 = arith.mulf %0, %1 : vector<2x32xf32>
    %3 = arith.truncf %2 : vector<2x32xf32> to vector<2x32xbf16>
    %c0_3 = arith.constant 0 : index
    %c0_4 = arith.constant 0 : index
    %4 = vector.load %arg2[%c0_3, %c0_4] : memref<32x2048xbf16, #tpu.memory_space<vmem>>, vector<32x2048xbf16>
    %cst = arith.constant dense<0.000000e+00> : vector<2x2048xf32>
    %5 = tpu.matmul %3, %4, %cst {dimension_numbers = #tpu.dot_dimension_numbers<[1], [0], [0], [1], [0, 0, 1, 1], [], []>} : vector<2x32xbf16>, vector<32x2048xbf16>, vector<2x2048xf32> -> vector<2x2048xf32>
    %c0_5 = arith.constant 0 : index
    %c0_6 = arith.constant 0 : index
    %6 = vector.load %arg3[%c0_5, %c0_6] : memref<1x2048xf32, #tpu.memory_space<vmem>>, vector<1x2048xf32>
    %7 = vector.broadcast %6 : vector<1x2048xf32> to vector<2x2048xf32>
    %8 = arith.mulf %5, %7 : vector<2x2048xf32>
    %c0_7 = arith.constant 0 : index
    %c0_8 = arith.constant 0 : index
    %9 = vector.load %arg4[%c0_7, %c0_8] : memref<1x2048xf32, #tpu.memory_space<vmem>>, vector<1x2048xf32>
    %10 = vector.broadcast %9 : vector<1x2048xf32> to vector<2x2048xf32>
    %11 = arith.addf %8, %10 : vector<2x2048xf32>
    %c0_9 = arith.constant 0 : index
    %c0_10 = arith.constant 0 : index
    %12 = vector.load %arg5[%c0_9, %c0_10] : memref<2x2048xf32, #tpu.memory_space<vmem>>, vector<2x2048xf32>
    tpu.vector_store %arg5[%c0_9, %c0_10], %11 {strides = array<i32>} : memref<2x2048xf32, #tpu.memory_space<vmem>>, vector<2x2048xf32>,
    return
  }
}

</mosaic_0001>

<bundles_post_ra>
// kernel: tpu_custom_call.1
= control target key start
LH: loop header
LB: loop body
LE: loop exit
PB: predicated region body
PF: predicated region fallthrough
CT: control target
= control target key end

     0   :  { %10 = vsyncpa [#allocation3], 0  ;;  %s1112_s0 = inlined_call_operand.hbm [shape: f32[2,32], index: 0, kind: input, shape index: {}]   ;;  %s1113_s1 = inlined_call_operand.hbm [shape: f32[2,32], index: 1, kind: input, shape index: {}]   ;;  %s1114_s2 = inlined_call_operand.hbm [shape: bf16[32,2048], index: 2, kind: input, shape index: {}]   ;;  %s1115_s3 = inlined_call_operand.hbm [shape: f32[1,2048], index: 3, kind: input, shape index: {}]   ;;  %s1116_s4 = inlined_call_operand.hbm [shape: f32[1,2048], index: 4, kind: input, shape index: {}]   ;;  %s1117_s5 = inlined_call_operand.hbm [shape: f32[2,2048], index: 5, kind: output, shape index: {}]  }
   0x1   :  { %11 = vsyncpa [#allocation6], 0 }
   0x2   :  { %12 = vsyncpa [#allocation9], 0  ;;  %s30_s20 = sshll.u32 %s1113_s1, 4  ;;  %s31_s20 = int_to_ptr.hbm [resolvable:$true] %s30_s20 }
   0x3   :  { %13 = vsyncpa [#allocation4], 0  ;;  %s1010_s21 = smov [#allocation5]   ;;  %s54_s25 = sshll.u32 %s1115_s3, 4  ;;  %s55_s25 = int_to_ptr.hbm [resolvable:$true] %s54_s25 }
   0x4   :  { %s32_s22 = sshll.u32 %s1010_s21, 4  ;;  %s1011_s26 = smov [#allocation8]   ;;  %s33_s22 = int_to_ptr.vmem [resolvable:$true] %s32_s22 }
   0x5   :  { %35 = dma.hbm_to_vmem [thread:$0]  %s31_s20, 32, %s33_s22, [#allocation6]  }
   0x6   :  { %s56_s27 = sshll.u32 %s1011_s26, 4  ;;  %s19_s30 = sshll.u32 %s1112_s0, 4  ;;  %s57_s27 = int_to_ptr.vmem [resolvable:$true] %s56_s27  ;;  %s20_s30 = int_to_ptr.hbm [resolvable:$true] %s19_s30 }
   0x7   :  { %59 = dma.hbm_to_vmem [thread:$0]  %s55_s25, 256, %s57_s27, [#allocation9]  }
   0x8   :  { %s40_s7 = sshll.u32 %s1114_s2, 4  ;;  %s1012_s8 = smov [#allocation2]   ;;  %s41_s7 = int_to_ptr.hbm [resolvable:$true] %s40_s7 }
   0x9   :  { %s21_s9 = sshll.u32 %s1012_s8, 4  ;;  %s1013_s3 = smov [#allocation7]   ;;  %s22_s9 = int_to_ptr.vmem [resolvable:$true] %s21_s9 }
   0xa   :  { %24 = dma.hbm_to_vmem [thread:$0]  %s20_s30, 32, %s22_s9, [#allocation3]  }
   0xb   :  { %s42_s10 = sshll.u32 %s1013_s3, 4  ;;  %s1014_s11 = smov 1024   ;;  %s43_s10 = int_to_ptr.vmem [resolvable:$true] %s42_s10 }
   0xc   :  { %s1015_s12 = smov 64   ;;  %s65_s14 = sshll.u32 %s1116_s4, 4  ;;  %s66_s14 = int_to_ptr.hbm [resolvable:$true] %s65_s14 }
   0xd   :  { %48 = dma.hbm_to_vmem [thread:$0]  %s41_s7, 4096, %s43_s10, [#allocation6], %s1014_s11, %s1014_s11, %s1015_s12  }
   0xe   :  { %s1016_s15 = smov [#allocation10]  }
   0xf   :  { %s67_s16 = sshll.u32 %s1016_s15, 4  ;;  %s68_s16 = int_to_ptr.vmem [resolvable:$true] %s67_s16 }
  0x10   :  { %70 = dma.hbm_to_vmem [thread:$0]  %s66_s14, 256, %s68_s16, [#allocation9]  }
  0x11   :  { %1002 = dma.done.wait [#allocation3], 32  }
  0x12   :  { %1003 = vsyncadd [#allocation3], 4294967264 }
  0x13   :  { %1004 = dma.done.wait [#allocation6], 4128  }
  0x14   :  { %1005 = vsyncadd [#allocation6], 4294963168 }
  0x15   :  { %1006 = dma.done.wait [#allocation9], 512  }
  0x16   :  { %1007 = vsyncadd [#allocation9], 4294966784  ;;  %vm288_vm0 = vcmask 261120   ;;  %v740_v0 = vld [vmem:[#allocation7 + $0x80] sm:$0xf]  ;;  %vm632_vm1 = vcmask 1041408  }
  0x17   :  { %v842_v1 = vld [vmem:[#allocation7 + $0xbc] sm:$0xf0]  ;;  %v834_v2 = vld [vmem:[#allocation7 + $0x84] sm:$0xf]  ;;  %v748_v5 = vld [vmem:[#allocation7 + $0x88] sm:$0xf] }
  0x18   :  { %v741_v3 = vor.u32 %v842_v1, %v740_v0  ;;  %v742_v4 = vld [vmem:[#allocation7 + $0xc0] sm:$0xf0]  ;;  %v843_v6 = vld [vmem:[#allocation7 + $0xc4] sm:$0xf0]  ;;  %v835_v9 = vld [vmem:[#allocation7 + $0x8c] sm:$0xf] }
  0x19   :  { %v745_v7 = vor.u32 %v834_v2, %v742_v4  ;;  %v749_v8 = vor.u32 %v843_v6, %v748_v5  ;;  %v750_v10 = vld [vmem:[#allocation7 + $0xc8] sm:$0xf0]  ;;  %v676_v11 = vld [vmem:[#allocation7] sm:$0xf]  ;;  %v818_v14 = vld [vmem:[#allocation7 + $0x4] sm:$0xf] }
  0x1a   :  { %298 = vmatpush.bf16.msra.mxu0 %v741_v3  ;;  %v753_v12 = vor.u32 %v835_v9, %v750_v10  ;;  %v826_v13 = vld [vmem:[#allocation7 + $0x3c] sm:$0xf0]  ;;  %v678_v15 = vld [vmem:[#allocation7 + $0x40] sm:$0xf0]  ;;  %v684_v18 = vld [vmem:[#allocation7 + $0x8] sm:$0xf] }
  0x1b   :  { %311 = vmatpush.bf16.msra.mxu1 %v745_v7  ;;  %324 = vmatpush.bf16.msra.mxu2 %v749_v8  ;;  %v677_v16 = vor.u32 %v826_v13, %v676_v11  ;;  %v681_v17 = vor.u32 %v818_v14, %v678_v15  ;;  %v827_v19 = vld [vmem:[#allocation7 + $0x44] sm:$0xf0]  ;;  %v819_v20 = vld [vmem:[#allocation7 + $0xc] sm:$0xf]  ;;  %v92_v23 = vld [vmem:[#allocation2] sm:$0x3] }
  0x1c   :  { %337 = vmatpush.bf16.msra.mxu3 %v753_v12  ;;  %v685_v21 = vor.u32 %v827_v19, %v684_v18  ;;  %v686_v22 = vld [vmem:[#allocation7 + $0x48] sm:$0xf0]  ;;  %v93_v24 = vld [vmem:[#allocation5] sm:$0x3]  ;;  %v764_v27 = vld [vmem:[#allocation7 + $0x98] sm:$0xf] }
  0x1d   :  { %v689_v25 = vor.u32 %v819_v20, %v686_v22  ;;  %v94_v26 = vmul.f32 %v93_v24, %v92_v23  ;;  %v845_v28 = vld [vmem:[#allocation7 + $0xd4] sm:$0xf0]  ;;  %v837_v29 = vld [vmem:[#allocation7 + $0x9c] sm:$0xf]  ;;  %v836_v32 = vld [vmem:[#allocation7 + $0x94] sm:$0xf] }
  0x1e   :  { %299 = vmatpush.bf16.msra.mxu0 %v677_v16  ;;  %v765_v30 = vor.u32 %v845_v28, %v764_v27  ;;  %v766_v31 = vld [vmem:[#allocation7 + $0xd8] sm:$0xf0]  ;;  %v758_v33 = vld [vmem:[#allocation7 + $0xd0] sm:$0xf0]  ;;  %v756_v37 = vld [vmem:[#allocation7 + $0x90] sm:$0xf] }
  0x1f   :  { %312 = vmatpush.bf16.msra.mxu1 %v681_v17  ;;  %325 = vmatpush.bf16.msra.mxu2 %v685_v21  ;;  %v1063_v34 = vpack.c.bf16 %v94_v26, %v94_v26  ;;  %v769_v35 = vor.u32 %v837_v29, %v766_v31  ;;  %v761_v36 = vor.u32 %v836_v32, %v758_v33  ;;  %v844_v38 = vld [vmem:[#allocation7 + $0xcc] sm:$0xf0]  ;;  %v700_v39 = vld [vmem:[#allocation7 + $0x18] sm:$0xf]  ;;  %v821_v42 = vld [vmem:[#allocation7 + $0x1c] sm:$0xf] }
  0x20   :  { %338 = vmatpush.bf16.msra.mxu3 %v689_v25  ;;  %v757_v40 = vor.u32 %v844_v38, %v756_v37  ;;  %v829_v41 = vld [vmem:[#allocation7 + $0x54] sm:$0xf0]  ;;  %v702_v43 = vld [vmem:[#allocation7 + $0x58] sm:$0xf0]  ;;  %v692_v46 = vld [vmem:[#allocation7 + $0x10] sm:$0xf] }
  0x21   :  { %802 = vmatmul.msk.bf16.vlgmr.msra.gmra.mxu0 %vm288_vm0, %v1063_v34  ;;  %v701_v44 = vor.u32 %v829_v41, %v700_v39  ;;  %v705_v45 = vor.u32 %v821_v42, %v702_v43  ;;  %v828_v47 = vld [vmem:[#allocation7 + $0x4c] sm:$0xf0]  ;;  %v820_v48 = vld [vmem:[#allocation7 + $0x14] sm:$0xf]  ;;  %v780_v50 = vld [vmem:[#allocation7 + $0xa8] sm:$0xf] }
  0x22   :  { %803 = vmatmul.msk.bf16.vlgmr.msra.gmra.mxu1 %vm288_vm0, %v1063_v34  ;;  %804 = vmatmul.msk.bf16.vlgmr.msra.gmra.mxu2 %vm288_vm0, %v1063_v34  ;;  %v694_v49 = vld [vmem:[#allocation7 + $0x50] sm:$0xf0]  ;;  %v847_v51 = vld [vmem:[#allocation7 + $0xe4] sm:$0xf0]  ;;  %v839_v54 = vld [vmem:[#allocation7 + $0xac] sm:$0xf]  ;;  %v693_v57 = vor.u32 %v828_v47, %v692_v46 }
  0x23   :  { %376 = vmatpush.bf16.msrb.mxu2 %v765_v30  ;;  %805 = vmatmul.msk.bf16.vlgmr.msra.gmra.mxu3 %vm288_vm0, %v1063_v34  ;;  %v697_v52 = vor.u32 %v820_v48, %v694_v49  ;;  %v781_v53 = vor.u32 %v847_v51, %v780_v50  ;;  %v782_v55 = vld [vmem:[#allocation7 + $0xe8] sm:$0xf0]  ;;  %v838_v56 = vld [vmem:[#allocation7 + $0xa4] sm:$0xf]  ;;  %v772_v60 = vld [vmem:[#allocation7 + $0xa0] sm:$0xf] }
  0x24   :  { %389 = vmatpush.bf16.msrb.mxu3 %v769_v35  ;;  %363 = vmatpush.bf16.msrb.mxu1 %v761_v36  ;;  %v785_v58 = vor.u32 %v839_v54, %v782_v55  ;;  %v774_v59 = vld [vmem:[#allocation7 + $0xe0] sm:$0xf0]  ;;  %v846_v61 = vld [vmem:[#allocation7 + $0xdc] sm:$0xf0]  ;;  %v716_v0 = vld [vmem:[#allocation7 + $0x28] sm:$0xf] }
  0x25   :  { %350 = vmatpush.bf16.msrb.mxu0 %v757_v40  ;;  %v777_v62 = vor.u32 %v838_v56, %v774_v59  ;;  %v773_v63 = vor.u32 %v846_v61, %v772_v60  ;;  %v831_v1 = vld [vmem:[#allocation7 + $0x64] sm:$0xf0]  ;;  %v823_v2 = vld [vmem:[#allocation7 + $0x2c] sm:$0xf]  ;;  %v708_v5 = vld [vmem:[#allocation7 + $0x20] sm:$0xf] }
  0x26   :  { %v717_v3 = vor.u32 %v831_v1, %v716_v0  ;;  %v718_v4 = vld [vmem:[#allocation7 + $0x68] sm:$0xf0]  ;;  %v830_v6 = vld [vmem:[#allocation7 + $0x5c] sm:$0xf0]  ;;  %v822_v8 = vld [vmem:[#allocation7 + $0x24] sm:$0xf] }
  0x27   :  { %377 = vmatpush.bf16.msrb.mxu2 %v701_v44  ;;  %v721_v7 = vor.u32 %v823_v2, %v718_v4  ;;  %v710_v9 = vld [vmem:[#allocation7 + $0x60] sm:$0xf0]  ;;  %v709_v11 = vor.u32 %v830_v6, %v708_v5  ;;  %v796_v12 = vld [vmem:[#allocation7 + $0xb8] sm:$0xf]  ;;  %v841_v14 = vld [vmem:[#allocation7 + $0xbc] sm:$0xf] }
  0x28   :  { %390 = vmatpush.bf16.msrb.mxu3 %v705_v45  ;;  %364 = vmatpush.bf16.msrb.mxu1 %v697_v52  ;;  %v713_v10 = vor.u32 %v822_v8, %v710_v9  ;;  %v849_v13 = vld [vmem:[#allocation7 + $0xf4] sm:$0xf0]  ;;  %v798_v15 = vld [vmem:[#allocation7 + $0xf8] sm:$0xf0]  ;;  %v840_v16 = vld [vmem:[#allocation7 + $0xb4] sm:$0xf] }
  0x29   :  { %351 = vmatpush.bf16.msrb.mxu0 %v693_v57  ;;  %v790_v17 = vld [vmem:[#allocation7 + $0xf0] sm:$0xf0]  ;;  %v788_v18 = vld [vmem:[#allocation7 + $0xb0] sm:$0xf]  ;;  %v797_v20 = vor.u32 %v849_v13, %v796_v12  ;;  %v801_v21 = vor.u32 %v841_v14, %v798_v15  ;;  %v732_v23 = vld [vmem:[#allocation7 + $0x38] sm:$0xf] }
  0x2a   :  { %v848_v19 = vld [vmem:[#allocation7 + $0xec] sm:$0xf0]  ;;  %v793_v22 = vor.u32 %v840_v16, %v790_v17  ;;  %v833_v24 = vld [vmem:[#allocation7 + $0x74] sm:$0xf0]  ;;  %v825_v25 = vld [vmem:[#allocation7 + $0x3c] sm:$0xf] }
  0x2b   :  { %428 = vmatpush.bf16.msra.mxu2 %v781_v53  ;;  %v789_v26 = vor.u32 %v848_v19, %v788_v18  ;;  %v734_v27 = vld [vmem:[#allocation7 + $0x78] sm:$0xf0]  ;;  %v824_v28 = vld [vmem:[#allocation7 + $0x34] sm:$0xf]  ;;  %v724_v30 = vld [vmem:[#allocation7 + $0x30] sm:$0xf]  ;;  %v733_v32 = vor.u32 %v833_v24, %v732_v23 }
  0x2c   :  { %441 = vmatpush.bf16.msra.mxu3 %v785_v58  ;;  %415 = vmatpush.bf16.msra.mxu1 %v777_v62  ;;  %v726_v29 = vld [vmem:[#allocation7 + $0x70] sm:$0xf0]  ;;  %v832_v31 = vld [vmem:[#allocation7 + $0x6c] sm:$0xf0]  ;;  %v737_v33 = vor.u32 %v825_v25, %v734_v27  ;;  %v500_v37 = vld [vmem:[#allocation8] sm:$0xff]  ;;  %vm634_vm2 = vcmask 1045508  }
  0x2d   :  { %402 = vmatpush.bf16.msra.mxu0 %v773_v63  ;;  %v729_v35 = vor.u32 %v824_v28, %v726_v29  ;;  %v725_v36 = vor.u32 %v832_v31, %v724_v30  ;;  %v552_v38 = vld [vmem:[#allocation10] sm:$0xff]  ;;  %v505_v39 = vperm.slane %v500_v37, 1  ;;  %v504_v41 = vperm.slane %v500_v37, 0  ;;  %v501_v27 = vld [vmem:[#allocation8 + $0x8] sm:$0xff]  ;;  %v553_v31 = vld [vmem:[#allocation10 + $0x8] sm:$0xff]  ;;  %s1017_s2 = smov [#allocation11]  }
  0x2e   :  { %v557_v43 = vperm.slane %v552_v38, 1  ;;  %v506_v45 = vperm.slane %v500_v37, 2  ;;  %v556_v47 = vperm.slane %v552_v38, 0  ;;  %v507_v49 = vperm.slane %v500_v37, 3  ;;  %s660_s4 = sshll.u32 %s1017_s2, 4  ;;  %s662_s19 = sshll.u32 %s1117_s5, 4  ;;  %s661_s4 = int_to_ptr.vmem [resolvable:$true] %s660_s4  ;;  %s663_s19 = int_to_ptr.hbm [resolvable:$true] %s662_s19 }
  0x2f   :  { %429 = vmatpush.bf16.msra.mxu2 %v717_v3  ;;  %v558_v50 = vperm.slane %v552_v38, 2  ;;  %v559_v52 = vperm.slane %v552_v38, 3  ;;  %vm636_vm3 = vcmask 1043456   ;;  %v509_v0 = vperm.slane %v500_v37, 5 }
  0x30   :  { %442 = vmatpush.bf16.msra.mxu3 %v721_v7  ;;  %416 = vmatpush.bf16.msra.mxu1 %v713_v10  ;;  %v508_v6 = vperm.slane %v500_v37, 4  ;;  %v561_v8 = vperm.slane %v552_v38, 5  ;;  %v510_v10 = vperm.slane %v500_v37, 6  ;;  %v560_v12 = vperm.slane %v552_v38, 4 }
  0x31   :  { %403 = vmatpush.bf16.msra.mxu0 %v709_v11  ;;  %v511_v14 = vperm.slane %v500_v37, 7  ;;  %v562_v15 = vperm.slane %v552_v38, 6  ;;  %v563_v17 = vperm.slane %v552_v38, 7 }
  0x32   :  { %806 = vmatmul.msk.bf16.vlgmr.msrb.gmra.mxu0 %vm288_vm0, %v1063_v34  ;;  %807 = vmatmul.msk.bf16.vlgmr.msrb.gmra.mxu1 %vm288_vm0, %v1063_v34 }
  0x33   :  { %808 = vmatmul.msk.bf16.vlgmr.msrb.gmra.mxu2 %vm288_vm0, %v1063_v34  ;;  %809 = vmatmul.msk.bf16.vlgmr.msrb.gmra.mxu3 %vm288_vm0, %v1063_v34 }
  0x34   :  { %480 = vmatpush.bf16.msrb.mxu2 %v797_v20  ;;  %493 = vmatpush.bf16.msrb.mxu3 %v801_v21 }
  0x35   :  { %467 = vmatpush.bf16.msrb.mxu1 %v793_v22  ;;  %454 = vmatpush.bf16.msrb.mxu0 %v789_v26 }
  0x38   :  { %481 = vmatpush.bf16.msrb.mxu2 %v733_v32  ;;  %494 = vmatpush.bf16.msrb.mxu3 %v737_v33  ;;  %v513_v32 = vperm.slane %v501_v27, 1 }
  0x39   :  { %468 = vmatpush.bf16.msrb.mxu1 %v729_v35  ;;  %455 = vmatpush.bf16.msrb.mxu0 %v725_v36 }
  0x42   :  { %810 = vmatmul.msk.bf16.vlgmr.msra.gmra.mxu0 %vm288_vm0, %v1063_v34  ;;  %811 = vmatmul.msk.bf16.vlgmr.msra.gmra.mxu1 %vm288_vm0, %v1063_v34 }
  0x43   :  { %812 = vmatmul.msk.bf16.vlgmr.msra.gmra.mxu2 %vm288_vm0, %v1063_v34  ;;  %813 = vmatmul.msk.bf16.vlgmr.msra.gmra.mxu3 %vm288_vm0, %v1063_v34 }
  0x52   :  { %814 = vmatmul.msk.bf16.vlgmr.msrb.gmra.mxu0 %vm288_vm0, %v1063_v34  ;;  %815 = vmatmul.msk.bf16.vlgmr.msrb.gmra.mxu1 %vm288_vm0, %v1063_v34 }
  0x53   :  { %816 = vmatmul.msk.bf16.vlgmr.msrb.gmra.mxu2 %vm288_vm0, %v1063_v34  ;;  %817 = vmatmul.msk.bf16.vlgmr.msrb.gmra.mxu3 %vm288_vm0, %v1063_v34 }
  0x9e   :  { %v301_v40 = vpop.f32.mrf.mxu0 }
  0x9f   :  { %v314_v42 = vpop.f32.mrf.mxu1  ;;  %v536_v46 = vmul.f32 %v504_v41, %v301_v40  ;;  %v565_v41 = vperm.slane %v553_v31, 1 }
  0xa0   :  { %v537_v44 = vmul.f32 %v505_v39, %v314_v42  ;;  %v512_v39 = vperm.slane %v501_v27, 0 }
  0xa1   :  { %v588_v34 = vadd.f32 %v556_v47, %v536_v46  ;;  %v515_v47 = vperm.slane %v501_v27, 3 }
  0xa2   :  { %v589_v48 = vadd.f32 %v557_v43, %v537_v44  ;;  %v514_v43 = vperm.slane %v501_v27, 2 }
  0xa4   :  { %v620_v56 = vrot.slane %v589_v48, 6  ;;  %v566_v48 = vperm.slane %v553_v31, 2 }
  0xa5   :  { %v327_v51 = vpop.f32.mrf.mxu2 }
  0xa6   :  { %v538_v53 = vmul.f32 %v506_v45, %v327_v51  ;;  %v340_v54 = vpop.f32.mrf.mxu3  ;;  %v303_v55 = vpop.f32.mrf.mxu0  ;;  %v633_v62 = vsel %vm632_vm1, %v588_v34, %v620_v56  ;;  %v564_v45 = vperm.slane %v553_v31, 0 }
  0xa7   :  { %v539_v57 = vmul.f32 %v507_v49, %v340_v54  ;;  %v316_v58 = vpop.f32.mrf.mxu1 }
  0xa8   :  { %v590_v59 = vadd.f32 %v558_v50, %v538_v53  ;;  %v567_v50 = vperm.slane %v553_v31, 3 }
  0xa9   :  { %v591_v60 = vadd.f32 %v559_v52, %v539_v57 }
  0xaa   :  { %v621_v61 = vrot.slane %v590_v59, 4 }
  0xab   :  { %v622_v63 = vrot.slane %v591_v60, 2 }
  0xad   :  { %v635_v1 = vsel %vm634_vm2, %v621_v61, %v622_v63  ;;  %v329_v2 = vpop.f32.mrf.mxu2 }
  0xae   :  { %v637_v3 = vsel %vm636_vm3, %v633_v62, %v635_v1  ;;  %v342_v4 = vpop.f32.mrf.mxu3  ;;  %v517_v62 = vperm.slane %v501_v27, 5 }
  0xaf   :  { %v353_v5 = vpop.f32.mrf.mxu0  ;;  %651 = vst [vmem:[#allocation11] sm:$0xff] %v637_v3  ;;  %v366_v7 = vpop.f32.mrf.mxu1  ;;  %v516_v4 = vperm.slane %v501_v27, 4 }
  0xb0   :  { %v541_v9 = vmul.f32 %v509_v0, %v366_v7  ;;  %v540_v11 = vmul.f32 %v508_v6, %v353_v5  ;;  %v569_v6 = vperm.slane %v553_v31, 5 }
  0xb2   :  { %v593_v13 = vadd.f32 %v561_v8, %v541_v9  ;;  %v592_v21 = vadd.f32 %v560_v12, %v540_v11  ;;  %v518_v8 = vperm.slane %v501_v27, 6  ;;  %v519_v12 = vperm.slane %v501_v27, 7 }
  0xb4   :  { %v623_v22 = vrot.slane %v593_v13, 6  ;;  %v570_v13 = vperm.slane %v553_v31, 6 }
  0xb6   :  { %v379_v16 = vpop.f32.mrf.mxu2  ;;  %v392_v19 = vpop.f32.mrf.mxu3  ;;  %v638_v29 = vsel %vm632_vm1, %v592_v21, %v623_v22 }
  0xb7   :  { %v542_v18 = vmul.f32 %v510_v10, %v379_v16  ;;  %v355_v20 = vpop.f32.mrf.mxu0  ;;  %v543_v23 = vmul.f32 %v511_v14, %v392_v19  ;;  %v368_v24 = vpop.f32.mrf.mxu1  ;;  %v568_v10 = vperm.slane %v553_v31, 4 }
  0xb9   :  { %v594_v25 = vadd.f32 %v562_v15, %v542_v18  ;;  %v595_v26 = vadd.f32 %v563_v17, %v543_v23  ;;  %v571_v15 = vperm.slane %v553_v31, 7 }
  0xbb   :  { %v624_v28 = vrot.slane %v594_v25, 4  ;;  %v625_v30 = vrot.slane %v595_v26, 2 }
  0xbd   :  { %v639_v33 = vsel %vm634_vm2, %v624_v28, %v625_v30 }
  0xbe   :  { %v381_v35 = vpop.f32.mrf.mxu2  ;;  %v640_v36 = vsel %vm636_vm3, %v638_v29, %v639_v33  ;;  %v394_v37 = vpop.f32.mrf.mxu3 }
  0xbf   :  { %v405_v38 = vpop.f32.mrf.mxu0  ;;  %652 = vst [vmem:[#allocation11 + $0x8] sm:$0xff] %v640_v36  ;;  %v418_v40 = vpop.f32.mrf.mxu1 }
  0xc0   :  { %v545_v42 = vmul.f32 %v513_v32, %v418_v40  ;;  %v544_v44 = vmul.f32 %v512_v39, %v405_v38 }
  0xc2   :  { %v597_v46 = vadd.f32 %v565_v41, %v545_v42  ;;  %v596_v54 = vadd.f32 %v564_v45, %v544_v44 }
  0xc4   :  { %v626_v55 = vrot.slane %v597_v46, 6 }
  0xc6   :  { %v431_v49 = vpop.f32.mrf.mxu2  ;;  %v444_v52 = vpop.f32.mrf.mxu3  ;;  %v641_v60 = vsel %vm632_vm1, %v596_v54, %v626_v55 }
  0xc7   :  { %v546_v51 = vmul.f32 %v514_v43, %v431_v49  ;;  %v407_v53 = vpop.f32.mrf.mxu0  ;;  %v547_v34 = vmul.f32 %v515_v47, %v444_v52  ;;  %v420_v56 = vpop.f32.mrf.mxu1 }
  0xc9   :  { %v598_v57 = vadd.f32 %v566_v48, %v546_v51  ;;  %v599_v58 = vadd.f32 %v567_v50, %v547_v34 }
  0xcb   :  { %v627_v59 = vrot.slane %v598_v57, 4  ;;  %v628_v61 = vrot.slane %v599_v58, 2 }
  0xcd   :  { %v642_v63 = vsel %vm634_vm2, %v627_v59, %v628_v61 }
  0xce   :  { %v433_v0 = vpop.f32.mrf.mxu2  ;;  %v643_v1 = vsel %vm636_vm3, %v641_v60, %v642_v63  ;;  %v446_v2 = vpop.f32.mrf.mxu3 }
  0xcf   :  { %v457_v3 = vpop.f32.mrf.mxu0  ;;  %653 = vst [vmem:[#allocation11 + $0x10] sm:$0xff] %v643_v1  ;;  %v470_v5 = vpop.f32.mrf.mxu1 }
  0xd0   :  { %v549_v7 = vmul.f32 %v517_v62, %v470_v5  ;;  %v548_v9 = vmul.f32 %v516_v4, %v457_v3 }
  0xd2   :  { %v601_v11 = vadd.f32 %v569_v6, %v549_v7  ;;  %v600_v19 = vadd.f32 %v568_v10, %v548_v9 }
  0xd4   :  { %v629_v20 = vrot.slane %v601_v11, 6 }
  0xd6   :  { %v483_v14 = vpop.f32.mrf.mxu2  ;;  %v496_v17 = vpop.f32.mrf.mxu3  ;;  %v644_v26 = vsel %vm632_vm1, %v600_v19, %v629_v20 }
  0xd7   :  { %v550_v16 = vmul.f32 %v518_v8, %v483_v14  ;;  %v459_v18 = vpop.f32.mrf.mxu0  ;;  %v551_v21 = vmul.f32 %v519_v12, %v496_v17  ;;  %v472_v22 = vpop.f32.mrf.mxu1 }
  0xd9   :  { %v602_v23 = vadd.f32 %v570_v13, %v550_v16  ;;  %v603_v24 = vadd.f32 %v571_v15, %v551_v21 }
  0xdb   :  { %v630_v25 = vrot.slane %v602_v23, 4  ;;  %v631_v27 = vrot.slane %v603_v24, 2 }
  0xdd   :  { %v645_v28 = vsel %vm634_vm2, %v630_v25, %v631_v27 }
  0xde   :  { %v485_v29 = vpop.f32.mrf.mxu2  ;;  %v646_v30 = vsel %vm636_vm3, %v644_v26, %v645_v28  ;;  %v498_v31 = vpop.f32.mrf.mxu3 }
  0xdf   :  { %654 = vst [vmem:[#allocation11 + $0x18] sm:$0xff] %v646_v30 }
  0xe0   :  { %665 = dma.vmem_to_hbm [thread:$0]  %s661_s4, 512, %s663_s19, [#allocation4]  }
  0xe1   :  { %1008 = dma.done.wait [#allocation4], 512  }
  0xe2   :  { %1009 = vsyncadd [#allocation4], 4294966784 }
  0xe3   :  { %670 = vsyncpa [#allocation3], 1 }
  0xe4   :  { %671 = vsyncpa [#allocation6], 1 }
  0xe5   :  { %672 = vsyncpa [#allocation9], 1 }
  0xe6   :  { %673 = vsyncpa [#allocation4], 1 }

</bundles_post_ra>
